<compile_context>
chip_gen: v7x
topology: tpu7x:2x2x1
jax: 0.10.0
libtpu: 0.0.40
codegen_flags: <defaults>
</compile_context>

<pallas_src>
import math

import jax
import jax.numpy as jnp
from jax.experimental import pallas as pl
from jax.experimental.pallas import tpu as pltpu


# ----------------------------- fused MHA kernel -----------------------------

def mha_kernel(q_ref, k_ref, v_ref, mask_ref,
               wq_ref, bq_ref, wk_ref, bk_ref, wv_ref, bv_ref,
               wo_ref, bo_ref,
               o_ref,
               acc_ref):
    """One grid step = one (batch b, head h) pair. H is the reduction axis."""
    h = pl.program_id(1)
    nh = pl.num_programs(1)

    @pl.when(h == 0)
    def _init():
        acc_ref[...] = jnp.zeros_like(acc_ref)

    x_q = q_ref[0]            # (S, D)
    x_k = k_ref[0]            # (S, D)
    x_v = v_ref[0]            # (S, D)

    wq = wq_ref[0]            # (D, d_k)
    wk = wk_ref[0]            # (D, d_k)
    wv = wv_ref[0]            # (D, d_k)
    wo = wo_ref[0]            # (d_k, D)

    # Per-head projections with bias fused into the matmul epilogue.
    q = jnp.dot(x_q, wq, preferred_element_type=jnp.float32) + bq_ref[0]
    k = jnp.dot(x_k, wk, preferred_element_type=jnp.float32) + bk_ref[0]
    v = jnp.dot(x_v, wv, preferred_element_type=jnp.float32) + bv_ref[0]

    # Fold 1/sqrt(d_k) into Q (touches S*d_k elems, not the (S,S) scores).
    d_k = q.shape[-1]
    q = q * jnp.float32(1.0 / math.sqrt(d_k))

    # scores: (S, S)
    scores = jnp.dot(q, k.T, preferred_element_type=jnp.float32)

    # Broadcast the (1, S) key mask inside the kernel (cheap VPU compare)
    # instead of materializing a (B*H, S, S) mask in HBM.
    keep = mask_ref[0]                                   # (1, S) int32
    scores = jnp.where(keep == 0, jnp.float32(-1e9), scores)

    # Numerically stable softmax; reciprocal goes to the EUP slot.
    m = jnp.max(scores, axis=-1, keepdims=True)
    e = jnp.exp(scores - m)
    l = jnp.sum(e, axis=-1, keepdims=True)
    p = e * pl.reciprocal(l, approx=True)
    # dropout(p_attn): identity in eval mode.

    attn = jnp.dot(p, v, preferred_element_type=jnp.float32)        # (S, d_k)

    # Per-head slice of the output projection; summing over heads is exactly
    # concat(heads) @ W_o of the reference, so merge_heads is fused away.
    acc_ref[...] += jnp.dot(attn, wo, preferred_element_type=jnp.float32)

    @pl.when(h == nh - 1)
    def _finalize():
        o_ref[0] = (acc_ref[...] + bo_ref[...]).astype(o_ref.dtype)


# ----------------------------- wrapper -----------------------------

def multi_headed_attention(params, query, key, value, mask=None, *, n_heads):
    """query/key/value: (B, S, D) float32.  mask: (B, 1, S), nonzero = keep."""
    B, S, D = query.shape
    H = n_heads
    assert D % H == 0
    d_k = D // H

    if mask is None:
        mask = jnp.ones((B, 1, S), jnp.float32)
    # int mask: avoid float exact-equality inside the kernel.
    mask_i32 = (mask != 0).astype(jnp.int32).reshape(B, 1, S)

    # One-time host-side weight re-layout to head-major slices so every kernel
    # block equals the full trailing dims (no sub-lane/sub-128 blocks).
    def per_head_in(w):        # (D, D) -> (H, D, d_k)
        return w.reshape(D, H, d_k).transpose(1, 0, 2)

    def per_head_bias(b):      # (D,) -> (H, 1, d_k)
        return b.reshape(H, 1, d_k)

    wq = per_head_in(params["wq"]); bq = per_head_bias(params["bq"])
    wk = per_head_in(params["wk"]); bk = per_head_bias(params["bk"])
    wv = per_head_in(params["wv"]); bv = per_head_bias(params["bv"])
    wo = params["wo"].reshape(H, d_k, D)      # (H, d_k, D)
    bo = params["bo"].reshape(1, D)

    def per_batch(i_b, i_h):   # activations / mask / output
        return (i_b, 0, 0)

    def per_head(i_b, i_h):    # per-head weight slices
        return (i_h, 0, 0)

    grid_spec = pltpu.PrefetchScalarGridSpec(
        num_scalar_prefetch=0,
        grid=(B, H),                       # head axis last = reduction axis
        in_specs=[
            pl.BlockSpec((1, S, D), per_batch),      # query
            pl.BlockSpec((1, S, D), per_batch),      # key
            pl.BlockSpec((1, S, D), per_batch),      # value
            pl.BlockSpec((1, 1, S), per_batch),      # mask (int32)
            pl.BlockSpec((1, D, d_k), per_head),     # wq
            pl.BlockSpec((1, 1, d_k), per_head),     # bq
            pl.BlockSpec((1, D, d_k), per_head),     # wk
            pl.BlockSpec((1, 1, d_k), per_head),     # bk
            pl.BlockSpec((1, D, d_k), per_head),     # wv
            pl.BlockSpec((1, 1, d_k), per_head),     # bv
            pl.BlockSpec((1, d_k, D), per_head),     # wo slice
            pl.BlockSpec((1, D), lambda i_b, i_h: (0, 0)),   # bo
        ],
        out_specs=pl.BlockSpec((1, S, D), per_batch),
        scratch_shapes=[pltpu.VMEM((S, D), jnp.float32)],    # f32 accumulator
    )

    return pl.pallas_call(
        mha_kernel,
        out_shape=jax.ShapeDtypeStruct((B, S, D), jnp.float32),
        grid_spec=grid_spec,
        compiler_params=pltpu.CompilerParams(
            dimension_semantics=("parallel", "arbitrary"),
            vmem_limit_bytes=32 * 1024 * 1024,
        ),
    )(query, key, value, mask_i32,
      wq, bq, wk, bk, wv, bv, wo, bo)


# ----------------------------- pure-JAX reference -----------------------------

def mha_reference(params, query, key, value, mask, n_heads):
    B, S, D = query.shape
    H = n_heads
    d_k = D // H

    def proj(x, w, b):
        return x @ w + b

    q = proj(query, params["wq"], params["bq"]).reshape(B, S, H, d_k).transpose(0, 2, 1, 3)
    k = proj(key, params["wk"], params["bk"]).reshape(B, S, H, d_k).transpose(0, 2, 1, 3)
    v = proj(value, params["wv"], params["bv"]).reshape(B, S, H, d_k).transpose(0, 2, 1, 3)

    scores = jnp.einsum("bhqd,bhkd->bhqk", q, k) / math.sqrt(d_k)
    scores = jnp.where(mask[:, None, :, :] == 0, jnp.float32(-1e9), scores)
    p = jax.nn.softmax(scores, axis=-1)
    out = jnp.einsum("bhqk,bhkd->bhqd", p, v).transpose(0, 2, 1, 3).reshape(B, S, D)
    return out @ params["wo"] + params["bo"]


# ----------------------------- parameter init -----------------------------

def init_params(key, d_model):
    ks = jax.random.split(key, 8)

    def w(k):
        return jax.random.normal(k, (d_model, d_model), jnp.float32) * 0.05

    def b(k):
        return jax.random.normal(k, (d_model,), jnp.float32) * 0.05

    return dict(wq=w(ks[0]), bq=b(ks[1]),
                wk=w(ks[2]), bk=b(ks[3]),
                wv=w(ks[4]), bv=b(ks[5]),
                wo=w(ks[6]), bo=b(ks[7]))


# ----------------------------- main -----------------------------

if __name__ == "__main__":
    B, S, D, H = 2, 8, 32, 4

    root = jax.random.PRNGKey(0)
    kq, kk, kv, kp = jax.random.split(root, 4)
    query = jax.random.normal(kq, (B, S, D), jnp.float32)
    key_in = jax.random.normal(kk, (B, S, D), jnp.float32)
    value = jax.random.normal(kv, (B, S, D), jnp.float32)

    # source-style mask: (B, 1, S); zero out the last two key positions of batch 1
    mask = jnp.ones((B, 1, S), jnp.float32).at[1, 0, S - 2:].set(0.0)

    params = init_params(kp, D)

    out = multi_headed_attention(params, query, key_in, value, mask, n_heads=H)
    out = jax.block_until_ready(out)
    assert out.shape == (B, S, D)

    ref = mha_reference(params, query, key_in, value, mask, H)
    max_err = float(jnp.max(jnp.abs(out - ref)))
    assert jnp.allclose(out, ref, atol=1e-2, rtol=1e-2), f"max_err={max_err}"

    print("KERNEL_OK")
</pallas_src>

<mosaic_0001>
module attributes {stable_mosaic.version = 11 : i64} {
  func.func @mha_kernel(%arg0: i32, %arg1: i32, %arg2: memref<1x8x32xf32, #tpu.memory_space<vmem>>, %arg3: memref<1x8x32xf32, #tpu.memory_space<vmem>>, %arg4: memref<1x8x32xf32, #tpu.memory_space<vmem>>, %arg5: memref<1x1x8xi32, #tpu.memory_space<vmem>>, %arg6: memref<1x32x8xf32, #tpu.memory_space<vmem>>, %arg7: memref<1x1x8xf32, #tpu.memory_space<vmem>>, %arg8: memref<1x32x8xf32, #tpu.memory_space<vmem>>, %arg9: memref<1x1x8xf32, #tpu.memory_space<vmem>>, %arg10: memref<1x32x8xf32, #tpu.memory_space<vmem>>, %arg11: memref<1x1x8xf32, #tpu.memory_space<vmem>>, %arg12: memref<1x8x32xf32, #tpu.memory_space<vmem>>, %arg13: memref<1x32xf32, #tpu.memory_space<vmem>>, %arg14: memref<1x8x32xf32, #tpu.memory_space<vmem>>, %arg15: memref<8x32xf32, #tpu.memory_space<vmem>>) attributes {dimension_semantics = [#tpu.dimension_semantics<parallel>, #tpu.dimension_semantics<arbitrary>], iteration_bounds = array<i64: 2, 4>, scalar_prefetch = 0 : i64, scratch_operands = 1 : i64, tpu.core_type = #tpu.core_type<tc>, window_params = [{transform_indices = @transform_0, window_bounds = array<i64: 1, 8, 32>}, {transform_indices = @transform_1, window_bounds = array<i64: 1, 8, 32>}, {transform_indices = @transform_2, window_bounds = array<i64: 1, 8, 32>}, {transform_indices = @transform_3, window_bounds = array<i64: 1, 1, 8>}, {transform_indices = @transform_4, window_bounds = array<i64: 1, 32, 8>}, {transform_indices = @transform_5, window_bounds = array<i64: 1, 1, 8>}, {transform_indices = @transform_6, window_bounds = array<i64: 1, 32, 8>}, {transform_indices = @transform_7, window_bounds = array<i64: 1, 1, 8>}, {transform_indices = @transform_8, window_bounds = array<i64: 1, 32, 8>}, {transform_indices = @transform_9, window_bounds = array<i64: 1, 1, 8>}, {transform_indices = @transform_10, window_bounds = array<i64: 1, 8, 32>}, {pipeline_mode = #tpu.pipeline_mode<synchronous>, transform_indices = @transform_11, window_bounds = array<i64: 1, 32>}, {transform_indices = @transform_12, window_bounds = array<i64: 1, 8, 32>}]} {
    %c0_i32 = arith.constant 0 : i32
    %0 = arith.cmpi eq, %arg1, %c0_i32 : i32
    %1 = arith.extui %0 : i1 to i32
    %c0_i32_0 = arith.constant 0 : i32
    %2 = arith.cmpi ne, %1, %c0_i32_0 : i32
    scf.if %2 {
      %cst_48 = arith.constant 0.000000e+00 : f32
      %62 = vector.broadcast %cst_48 : f32 to vector<8x32xf32>
      %c0_49 = arith.constant 0 : index
      %c0_50 = arith.constant 0 : index
      %63 = vector.load %arg15[%c0_49, %c0_50] : memref<8x32xf32, #tpu.memory_space<vmem>>, vector<8x32xf32>
      tpu.vector_store %arg15[%c0_49, %c0_50], %62 {strides = array<i32>} : memref<8x32xf32, #tpu.memory_space<vmem>>, vector<8x32xf32>,
    } else {
    }
    %c0 = arith.constant 0 : index
    %c0_1 = arith.constant 0 : index
    %c0_2 = arith.constant 0 : index
    %3 = vector.load %arg2[%c0, %c0_1, %c0_2] : memref<1x8x32xf32, #tpu.memory_space<vmem>>, vector<1x8x32xf32>
    %4 = vector.shape_cast %3 : vector<1x8x32xf32> to vector<8x32xf32>
    %c0_3 = arith.constant 0 : index
    %c0_4 = arith.constant 0 : index
    %c0_5 = arith.constant 0 : index
    %5 = vector.load %arg3[%c0_3, %c0_4, %c0_5] : memref<1x8x32xf32, #tpu.memory_space<vmem>>, vector<1x8x32xf32>
    %6 = vector.shape_cast %5 : vector<1x8x32xf32> to vector<8x32xf32>
    %c0_6 = arith.constant 0 : index
    %c0_7 = arith.constant 0 : index
    %c0_8 = arith.constant 0 : index
    %7 = vector.load %arg4[%c0_6, %c0_7, %c0_8] : memref<1x8x32xf32, #tpu.memory_space<vmem>>, vector<1x8x32xf32>
    %8 = vector.shape_cast %7 : vector<1x8x32xf32> to vector<8x32xf32>
    %c0_9 = arith.constant 0 : index
    %c0_10 = arith.constant 0 : index
    %c0_11 = arith.constant 0 : index
    %9 = vector.load %arg6[%c0_9, %c0_10, %c0_11] : memref<1x32x8xf32, #tpu.memory_space<vmem>>, vector<1x32x8xf32>
    %10 = vector.shape_cast %9 : vector<1x32x8xf32> to vector<32x8xf32>
    %c0_12 = arith.constant 0 : index
    %c0_13 = arith.constant 0 : index
    %c0_14 = arith.constant 0 : index
    %11 = vector.load %arg8[%c0_12, %c0_13, %c0_14] : memref<1x32x8xf32, #tpu.memory_space<vmem>>, vector<1x32x8xf32>
    %12 = vector.shape_cast %11 : vector<1x32x8xf32> to vector<32x8xf32>
    %c0_15 = arith.constant 0 : index
    %c0_16 = arith.constant 0 : index
    %c0_17 = arith.constant 0 : index
    %13 = vector.load %arg10[%c0_15, %c0_16, %c0_17] : memref<1x32x8xf32, #tpu.memory_space<vmem>>, vector<1x32x8xf32>
    %14 = vector.shape_cast %13 : vector<1x32x8xf32> to vector<32x8xf32>
    %c0_18 = arith.constant 0 : index
    %c0_19 = arith.constant 0 : index
    %c0_20 = arith.constant 0 : index
    %15 = vector.load %arg12[%c0_18, %c0_19, %c0_20] : memref<1x8x32xf32, #tpu.memory_space<vmem>>, vector<1x8x32xf32>
    %16 = vector.shape_cast %15 : vector<1x8x32xf32> to vector<8x32xf32>
    %cst = arith.constant dense<0.000000e+00> : vector<8x8xf32>
    %17 = tpu.matmul %4, %10, %cst {dimension_numbers = #tpu.dot_dimension_numbers<[1], [0], [0], [1], [0, 0, 1, 1], [], []>} : vector<8x32xf32>, vector<32x8xf32>, vector<8x8xf32> -> vector<8x8xf32>
    %c0_21 = arith.constant 0 : index
    %c0_22 = arith.constant 0 : index
    %c0_23 = arith.constant 0 : index
    %18 = vector.load %arg7[%c0_21, %c0_22, %c0_23] : memref<1x1x8xf32, #tpu.memory_space<vmem>>, vector<1x1x8xf32>
    %19 = vector.shape_cast %18 : vector<1x1x8xf32> to vector<1x8xf32>
    %20 = vector.broadcast %19 : vector<1x8xf32> to vector<8x8xf32>
    %21 = arith.addf %17, %20 : vector<8x8xf32>
    %cst_24 = arith.constant dense<0.000000e+00> : vector<8x8xf32>
    %22 = tpu.matmul %6, %12, %cst_24 {dimension_numbers = #tpu.dot_dimension_numbers<[1], [0], [0], [1], [0, 0, 1, 1], [], []>} : vector<8x32xf32>, vector<32x8xf32>, vector<8x8xf32> -> vector<8x8xf32>
    %c0_25 = arith.constant 0 : index
    %c0_26 = arith.constant 0 : index
    %c0_27 = arith.constant 0 : index
    %23 = vector.load %arg9[%c0_25, %c0_26, %c0_27] : memref<1x1x8xf32, #tpu.memory_space<vmem>>, vector<1x1x8xf32>
    %24 = vector.shape_cast %23 : vector<1x1x8xf32> to vector<1x8xf32>
    %25 = vector.broadcast %24 : vector<1x8xf32> to vector<8x8xf32>
    %26 = arith.addf %22, %25 : vector<8x8xf32>
    %cst_28 = arith.constant dense<0.000000e+00> : vector<8x8xf32>
    %27 = tpu.matmul %8, %14, %cst_28 {dimension_numbers = #tpu.dot_dimension_numbers<[1], [0], [0], [1], [0, 0, 1, 1], [], []>} : vector<8x32xf32>, vector<32x8xf32>, vector<8x8xf32> -> vector<8x8xf32>
    %c0_29 = arith.constant 0 : index
    %c0_30 = arith.constant 0 : index
    %c0_31 = arith.constant 0 : index
    %28 = vector.load %arg11[%c0_29, %c0_30, %c0_31] : memref<1x1x8xf32, #tpu.memory_space<vmem>>, vector<1x1x8xf32>
    %29 = vector.shape_cast %28 : vector<1x1x8xf32> to vector<1x8xf32>
    %30 = vector.broadcast %29 : vector<1x8xf32> to vector<8x8xf32>
    %31 = arith.addf %27, %30 : vector<8x8xf32>
    %cst_32 = arith.constant 0.353553385 : f32
    %32 = vector.broadcast %cst_32 : f32 to vector<8x8xf32>
    %33 = arith.mulf %21, %32 : vector<8x8xf32>
    %34 = tpu.transpose %26, [1, 0] : vector<8x8xf32> -> vector<8x8xf32>
    %cst_33 = arith.constant dense<0.000000e+00> : vector<8x8xf32>
    %35 = tpu.matmul %33, %34, %cst_33 {dimension_numbers = #tpu.dot_dimension_numbers<[1], [0], [0], [1], [0, 0, 1, 1], [], []>} : vector<8x8xf32>, vector<8x8xf32>, vector<8x8xf32> -> vector<8x8xf32>
    %c0_34 = arith.constant 0 : index
    %c0_35 = arith.constant 0 : index
    %c0_36 = arith.constant 0 : index
    %36 = vector.load %arg5[%c0_34, %c0_35, %c0_36] : memref<1x1x8xi32, #tpu.memory_space<vmem>>, vector<1x1x8xi32>
    %37 = vector.shape_cast %36 : vector<1x1x8xi32> to vector<1x8xi32>
    %c0_i32_37 = arith.constant 0 : i32
    %38 = vector.broadcast %c0_i32_37 : i32 to vector<1x8xi32>
    %39 = arith.cmpi eq, %37, %38 : vector<1x8xi32>
    %cst_38 = arith.constant -1.000000e+09 : f32
    %40 = vector.shape_cast %39 : vector<1x8xi1> to vector<1x8xi1>
    %41 = vector.broadcast %40 : vector<1x8xi1> to vector<8x8xi1>
    %42 = vector.broadcast %cst_38 : f32 to vector<8x8xf32>
    %43 = arith.select %41, %42, %35 : vector<8x8xi1>, vector<8x8xf32>
    %cst_39 = arith.constant dense<0xFF800000> : vector<8xf32>
    %44 = vector.multi_reduction <maximumf>, %43, %cst_39 [1] : vector<8x8xf32> to vector<8xf32>
    %45 = vector.shape_cast %44 : vector<8xf32> to vector<8x1xf32>
    %46 = vector.broadcast %45 : vector<8x1xf32> to vector<8x8xf32>
    %47 = arith.subf %43, %46 : vector<8x8xf32>
    %48 = math.exp %47 : vector<8x8xf32>
    %cst_40 = arith.constant dense<0.000000e+00> : vector<8xf32>
    %49 = vector.multi_reduction <add>, %48, %cst_40 [1] : vector<8x8xf32> to vector<8xf32>
    %50 = vector.shape_cast %49 : vector<8xf32> to vector<8x1xf32>
    %51 = tpu.reciprocal %50 {approx = true} : vector<8x1xf32> -> vector<8x1xf32>
    %52 = vector.broadcast %51 : vector<8x1xf32> to vector<8x8xf32>
    %53 = arith.mulf %48, %52 : vector<8x8xf32>
    %cst_41 = arith.constant dense<0.000000e+00> : vector<8x8xf32>
    %54 = tpu.matmul %53, %31, %cst_41 {dimension_numbers = #tpu.dot_dimension_numbers<[1], [0], [0], [1], [0, 0, 1, 1], [], []>} : vector<8x8xf32>, vector<8x8xf32>, vector<8x8xf32> -> vector<8x8xf32>
    %c0_42 = arith.constant 0 : index
    %c0_43 = arith.constant 0 : index
    %55 = vector.load %arg15[%c0_42, %c0_43] : memref<8x32xf32, #tpu.memory_space<vmem>>, vector<8x32xf32>
    %cst_44 = arith.constant dense<0.000000e+00> : vector<8x32xf32>
    %56 = tpu.matmul %54, %16, %cst_44 {dimension_numbers = #tpu.dot_dimension_numbers<[1], [0], [0], [1], [0, 0, 1, 1], [], []>} : vector<8x8xf32>, vector<8x32xf32>, vector<8x32xf32> -> vector<8x32xf32>
    %57 = arith.addf %55, %56 : vector<8x32xf32>
    %c0_45 = arith.constant 0 : index
    %c0_46 = arith.constant 0 : index
    %58 = vector.load %arg15[%c0_45, %c0_46] : memref<8x32xf32, #tpu.memory_space<vmem>>, vector<8x32xf32>
    tpu.vector_store %arg15[%c0_45, %c0_46], %57 {strides = array<i32>} : memref<8x32xf32, #tpu.memory_space<vmem>>, vector<8x32xf32>,
    %c3_i32 = arith.constant 3 : i32
    %59 = arith.cmpi eq, %arg1, %c3_i32 : i32
    %60 = arith.extui %59 : i1 to i32
    %c0_i32_47 = arith.constant 0 : i32
    %61 = arith.cmpi ne, %60, %c0_i32_47 : i32
    scf.if %61 {
      %c0_48 = arith.constant 0 : index
      %c0_49 = arith.constant 0 : index
      %62 = vector.load %arg15[%c0_48, %c0_49] : memref<8x32xf32, #tpu.memory_space<vmem>>, vector<8x32xf32>
      %c0_50 = arith.constant 0 : index
      %c0_51 = arith.constant 0 : index
      %63 = vector.load %arg13[%c0_50, %c0_51] : memref<1x32xf32, #tpu.memory_space<vmem>>, vector<1x32xf32>
      %64 = vector.broadcast %63 : vector<1x32xf32> to vector<8x32xf32>
      %65 = arith.addf %62, %64 : vector<8x32xf32>
      %c0_52 = arith.constant 0 : index
      %c0_53 = arith.constant 0 : index
      %c0_54 = arith.constant 0 : index
      %66 = vector.load %arg14[%c0_52, %c0_53, %c0_54] : memref<1x8x32xf32, #tpu.memory_space<vmem>>, vector<1x8x32xf32>
      %67 = vector.shape_cast %66 : vector<1x8x32xf32> to vector<8x32xf32>
      %68 = vector.shape_cast %65 : vector<8x32xf32> to vector<1x8x32xf32>
      tpu.vector_store %arg14[%c0_52, %c0_53, %c0_54], %68 {strides = array<i32>} : memref<1x8x32xf32, #tpu.memory_space<vmem>>, vector<1x8x32xf32>,
    } else {
    }
    return
  }
  func.func @transform_0(%arg0: i32, %arg1: i32) -> (i32, i32, i32) {
    %c0_i32 = arith.constant 0 : i32
    %c0_i32_0 = arith.constant 0 : i32
    %c0_i32_1 = arith.constant 0 : i32
    return %arg0, %c0_i32, %c0_i32_0 : i32, i32, i32
  }
  func.func @transform_1(%arg0: i32, %arg1: i32) -> (i32, i32, i32) {
    %c0_i32 = arith.constant 0 : i32
    %c0_i32_0 = arith.constant 0 : i32
    %c0_i32_1 = arith.constant 0 : i32
    return %arg0, %c0_i32, %c0_i32_0 : i32, i32, i32
  }
  func.func @transform_2(%arg0: i32, %arg1: i32) -> (i32, i32, i32) {
    %c0_i32 = arith.constant 0 : i32
    %c0_i32_0 = arith.constant 0 : i32
    %c0_i32_1 = arith.constant 0 : i32
    return %arg0, %c0_i32, %c0_i32_0 : i32, i32, i32
  }
  func.func @transform_3(%arg0: i32, %arg1: i32) -> (i32, i32, i32) {
    %c0_i32 = arith.constant 0 : i32
    %c0_i32_0 = arith.constant 0 : i32
    %c0_i32_1 = arith.constant 0 : i32
    return %arg0, %c0_i32, %c0_i32_0 : i32, i32, i32
  }
  func.func @transform_4(%arg0: i32, %arg1: i32) -> (i32, i32, i32) {
    %c0_i32 = arith.constant 0 : i32
    %c0_i32_0 = arith.constant 0 : i32
    %c0_i32_1 = arith.constant 0 : i32
    return %arg1, %c0_i32, %c0_i32_0 : i32, i32, i32
  }
  func.func @transform_5(%arg0: i32, %arg1: i32) -> (i32, i32, i32) {
    %c0_i32 = arith.constant 0 : i32
    %c0_i32_0 = arith.constant 0 : i32
    %c0_i32_1 = arith.constant 0 : i32
    return %arg1, %c0_i32, %c0_i32_0 : i32, i32, i32
  }
  func.func @transform_6(%arg0: i32, %arg1: i32) -> (i32, i32, i32) {
    %c0_i32 = arith.constant 0 : i32
    %c0_i32_0 = arith.constant 0 : i32
    %c0_i32_1 = arith.constant 0 : i32
    return %arg1, %c0_i32, %c0_i32_0 : i32, i32, i32
  }
  func.func @transform_7(%arg0: i32, %arg1: i32) -> (i32, i32, i32) {
    %c0_i32 = arith.constant 0 : i32
    %c0_i32_0 = arith.constant 0 : i32
    %c0_i32_1 = arith.constant 0 : i32
    return %arg1, %c0_i32, %c0_i32_0 : i32, i32, i32
  }
  func.func @transform_8(%arg0: i32, %arg1: i32) -> (i32, i32, i32) {
    %c0_i32 = arith.constant 0 : i32
    %c0_i32_0 = arith.constant 0 : i32
    %c0_i32_1 = arith.constant 0 : i32
    return %arg1, %c0_i32, %c0_i32_0 : i32, i32, i32
  }
  func.func @transform_9(%arg0: i32, %arg1: i32) -> (i32, i32, i32) {
    %c0_i32 = arith.constant 0 : i32
    %c0_i32_0 = arith.constant 0 : i32
    %c0_i32_1 = arith.constant 0 : i32
    return %arg1, %c0_i32, %c0_i32_0 : i32, i32, i32
  }
  func.func @transform_10(%arg0: i32, %arg1: i32) -> (i32, i32, i32) {
    %c0_i32 = arith.constant 0 : i32
    %c0_i32_0 = arith.constant 0 : i32
    %c0_i32_1 = arith.constant 0 : i32
    return %arg1, %c0_i32, %c0_i32_0 : i32, i32, i32
  }
  func.func @transform_11(%arg0: i32, %arg1: i32) -> (i32, i32) {
    %c0_i32 = arith.constant 0 : i32
    %c0_i32_0 = arith.constant 0 : i32
    %c0_i32_1 = arith.constant 0 : i32
    return %c0_i32, %c0_i32_0 : i32, i32
  }
  func.func @transform_12(%arg0: i32, %arg1: i32) -> (i32, i32, i32) {
    %c0_i32 = arith.constant 0 : i32
    %c0_i32_0 = arith.constant 0 : i32
    %c0_i32_1 = arith.constant 0 : i32
    return %arg0, %c0_i32, %c0_i32_0 : i32, i32, i32
  }
}

</mosaic_0001>

<bundles_post_ra>
// kernel: tpu_custom_call.1
= control target key start
LH: loop header
LB: loop body
LE: loop exit
PB: predicated region body
PF: predicated region fallthrough
CT: control target
= control target key end

     0   :  { %s1925_s0 = inlined_call_operand.vmem [shape: f32[2,8,32], index: 0, kind: input, shape index: {}]   ;;  %s1926_s1 = inlined_call_operand.vmem [shape: f32[2,8,32], index: 1, kind: input, shape index: {}]   ;;  %s1927_s2 = inlined_call_operand.vmem [shape: f32[2,8,32], index: 2, kind: input, shape index: {}]   ;;  %s1928_s3 = inlined_call_operand.vmem [shape: s32[2,1,8], index: 3, kind: input, shape index: {}]   ;;  %s1929_s4 = inlined_call_operand.vmem [shape: f32[4,32,8], index: 4, kind: input, shape index: {}]   ;;  %s1930_s5 = inlined_call_operand.vmem [shape: f32[4,1,8], index: 5, kind: input, shape index: {}]   ;;  %s1931_s6 = inlined_call_operand.vmem [shape: f32[4,32,8], index: 6, kind: input, shape index: {}]   ;;  %s1932_s7 = inlined_call_operand.vmem [shape: f32[4,1,8], index: 7, kind: input, shape index: {}]   ;;  %s1933_s8 = inlined_call_operand.vmem [shape: f32[4,32,8], index: 8, kind: input, shape index: {}]   ;;  %s1934_s9 = inlined_call_operand.vmem [shape: f32[4,1,8], index: 9, kind: input, shape index: {}]   ;;  %s1935_s10 = inlined_call_operand.vmem [shape: f32[4,8,32], index: 10, kind: input, shape index: {}]   ;;  %s1936_s11 = inlined_call_operand.vmem [shape: f32[1,32], index: 11, kind: input, shape index: {}]   ;;  %s1937_s12 = inlined_call_operand.hbm [shape: f32[2,8,32], index: 12, kind: output, shape index: {}]  }
   0x1   :  { %1953 = sst [smem:[#allocation19_spill]] %s1928_s3 }
   0x2   :  { %1954 = sst [smem:[#allocation20_spill]] %s1929_s4 }
   0x3   :  { %1955 = sst [smem:[#allocation21_spill]] %s1936_s11 }
   0x4   :  { %1956 = sst [smem:[#allocation22_spill]] %s1937_s12 }
   0x5   :  { %17 = vsyncpa [#allocation4], 0 }
   0x6   :  { %19 = vsyncpa [#allocation4 + $0x1], 0  ;;  %s1674_s21 = smov 0   ;;  %s1676_s22 = smov 0  }
   0x7   :  { %s1678_s23 = smov 0   ;;  %s1680_s24 = smov 0  }
   0x8   :  { %s1682_s25 = smov 0   ;;  %s1684_s26 = smov 0  }
   0x9   :  { %s1686_s27 = smov 0   ;;  %s1688_s28 = smov 0  }
   0xa LB: > { %1957 = sst [smem:[#allocation6_spill]] %s1573_s21  ;;  %s1304_s29 = sadd.s32 4294967295, %s1601_s28   ;;  %s1601_s28 = sphi %s1688_s28, %s25_s28   ;;  %s1597_s27 = sphi %s1686_s27, %s1998_s27   ;;  %s1593_s26 = sphi %s1684_s26, %s1997_s26   ;;  %s1589_s25 = sphi %s1682_s25, %s1996_s25   ;;  %s1585_s24 = sphi %s1680_s24, %s1995_s24   ;;  %s1581_s23 = sphi %s1678_s23, %s1994_s23   ;;  %s1577_s22 = sphi %s1676_s22, %s1993_s22   ;;  %s1573_s21 = sphi %s1674_s21, %s1992_s21  }
   0xb   : > { %1958 = sst [smem:[#allocation7_spill]] %s1577_s22  ;;  %s1305_s30 = sadd.s32 4294967294, %s1601_s28  }
   0xc   : > { %1959 = sst [smem:[#allocation8_spill]] %s1581_s23  ;;  %s34_s13 = sadd.s32 1, %s1593_s26 }
   0xd   : > { %1960 = sst [smem:[#allocation9_spill]] %s1585_s24  ;;  %p35_p0 = scmp.ge.s32.totalorder %s34_s13, 4 }
   0xe   : > { %1961 = sst [smem:[#allocation10_spill]] %s1589_s25  ;;  %s37_s14 = sadd.s32 1, %s1597_s27 }
   0xf   : > { %1962 = sst [smem:[#allocation11_spill]] %s1593_s26  ;;  %p361_p1 = scmp.ne.s32.totalorder %s1581_s23, %s1577_s22 }
  0x10   : > { %1963 = sst [smem:[#allocation12_spill]] %s1597_s27  ;;  %p362_p2 = scmp.eq.s32.totalorder %s1304_s29, 7 }
  0x11   : > { %1964 = sst [smem:[#allocation13_spill]] %s1601_s28  ;;  %s2000_s13 = smov (%p35_p0, %s34_s13), 0 }
  0x12   : > { %1965 = sst [smem:[#allocation14_spill]] %s2000_s13  ;;  %s2002_s14 = smov (!%p35_p0, %s37_s14), %s1597_s27 }
  0x13   : > { %p1723_p3 = por %p362_p2, %p361_p1  ;;  %p367_p4 = scmp.ne.s32.totalorder %s1577_s22, %s1573_s21 }
  0x14   : > { %p39_p5 = scmp.ge.s32.totalorder %s2002_s14, 2  ;;  %p368_p6 = scmp.eq.s32.totalorder %s1305_s30, 7 }
  0x15   : > { %s1966_s15 = scalar_select %p1723_p3, 1, 0 }
  0x16   : > { %p1308_p7 = scmp.ge.s32.totalorder %s1601_s28, 1  ;;  %p465_p8 = scmp.lt.s32.totalorder %s1601_s28, 9 }
  0x17   : > { %1967 = sst [smem:[#allocation15_spill]] %s1966_s15  ;;  %s2004_s14 = smov (%p39_p5, %s2002_s14), 0 }
  0x18   : > { %1968 = sst [smem:[#allocation16_spill]] %s2004_s14  ;;  %p1733_p9 = por %p368_p6, %p367_p4 }
  0x19   : > { %p466_p10 = pnand %p1308_p7, %p465_p8  ;;  %s348_s17 = ssub.s32 %s1597_s27, %s2004_s14 }
  0x1a   : > { %s1969_s16 = scalar_select %p1733_p9, 1, 0 }
  0x1b   : > { %s351_s18 = sadd.s32 1, %s1581_s23  ;;  %p349_p11 = scmp.eq.s32.totalorder %s348_s17, 0 }
  0x1c   : > { %1970 = sst [smem:[#allocation17_spill]] %s1969_s16  ;;  %469 = sbr.rel (%p466_p10) target bundleno = 1267 (0x4f3), region = 68 }
  0x1d   : > { %s1741_s19 = scalar_select %p349_p11, %s1581_s23, %s351_s18  }
  0x1e   : > { %s1939_s20 = sand.u32 (!%p466_p10), 1, %s1577_s22   ;;  %p545_p12 = scmp.lt.s32.totalorder (!%p466_p10), %s1589_s25, 1 }
  0x1f   : > { %1971 = sst [smem:[#allocation18_spill]] %s1741_s19  ;;  %s1747_s29 = sshll.u32 (!%p466_p10), %s1939_s20, 3 }
  0x20   : > { %p560_p13 = scmp.lt.s32.totalorder (!%p466_p10), %s1585_s24, 3  ;;  %s1973_s4 = sld [smem:[#allocation20_spill]] (!%p466_p10) }
  0x21   : > { %s544_s3 = scalar_lea.vmem (!%p466_p10), [#allocation3], %s1747_s29  ;;  %s1974_s26 = sld [smem:[#allocation9_spill]] (!%p466_p10) }
  0x23   : > { %s1751_s30 = scalar_select %p545_p12, %s1589_s25, 1 }
  0x24   : > { %s1754_s17 = scalar_select %p560_p13, %s1585_s24, 3 }
  0x25   : > { %s1757_s18 = sshll.u32 %s1751_s30, 3 }
  0x26   : > { %s1337_s22 = sshll.u32 %s1754_s17, 5  ;;  %s575_s16 = scalar_lea.vmem %s1932_s7, %s1754_s17 }
  0x27   : > { %s564_s13 = scalar_lea.vmem %s1973_s4, %s1337_s22  ;;  %s572_s27 = scalar_lea.vmem %s1931_s6, %s1337_s22 }
  0x28   : > { %s1793_s28 = scalar_lea.vmem %s1933_s8, %s1337_s22  ;;  %s583_s25 = scalar_lea.vmem %s1934_s9, %s1754_s17 }
  0x29   : > { %s1319_s4 = sshll.u32 %s1754_s17, 3  ;;  %p1320_p0 = scmp.ne.s32.totalorder %s1974_s26, 0 }
  0x2a   : > { %s1803_s20 = scalar_lea.vmem %s1935_s10, %s1319_s4  ;;  %vm592_vm0 = vcmask (!%p1320_p0), 261120   ;;  %v1603_v0 = vmov (!%p1320_p0), 0.0  }
  0x2b   : > { %591 = sbr.rel (%p1320_p0) target bundleno = 50 (0x32), region = 72  ;;  %593 = vst.msk [vmem:[#allocation2] sm:$0xff] (!%p1320_p0), %vm592_vm0, %v1603_v0 }
  0x32 PF: > { %v601_v1 = vld [vmem:[%s572_s27] sm:$0xff]  ;;  %v602_v2 = vld [vmem:[%s572_s27 + $0x8] sm:$0xff]  ;;  %v1604_v4 = vmov 0.0|0.0   ;;  %v603_v7 = vld [vmem:[%s572_s27 + $0x10] sm:$0xff]  ;;  %vm1605_vm1 = vmmov 0   ;;  %v1606_v12 = vmov 0.0   ;;  %s1975_s22 = scalar_lea.vmem %s1926_s1, %s1757_s18  ;;  %s1977_s24 = scalar_lea.vmem %s1930_s5, %s1754_s17  ;;  %v932_v33 = vlaneseq }
  0x33   : > { %v597_v3 = vld [vmem:[%s564_s13] sm:$0xff]  ;;  %1415 = vmatprep.subr.bf16.mxu1 %v1604_v4  ;;  %1409 = vmatprep.subr.bf16.mxu0 %v1604_v4  ;;  %v1416_v5 = vpack.c.bf16 %v602_v2, %v601_v1  ;;  %v598_v6 = vld [vmem:[%s564_s13 + $0x8] sm:$0xff]  ;;  %v604_v8 = vld [vmem:[%s572_s27 + $0x18] sm:$0xff]  ;;  %vm617_vm2 = vcmask 261120   ;;  %vm852_vm3 = vcmask 64512   ;;  %s1978_s26 = scalar_lea.vmem %s1927_s2, %s1757_s18  ;;  %v1607_v37 = vmov 0  }
  0x34   : > { %v1410_v9 = vpack.c.bf16 %v598_v6, %v597_v3  ;;  %v599_v10 = vld [vmem:[%s564_s13 + $0x10] sm:$0xff]  ;;  %v600_v11 = vld [vmem:[%s564_s13 + $0x18] sm:$0xff]  ;;  %1380 = vmatprep.mubr.msk.f32.mxu1 %vm1605_vm1, %v1606_v12  ;;  %1369 = vmatprep.mubr.msk.f32.mxu0 %vm1605_vm1, %v1606_v12  ;;  %v1419_v13 = vpack.c.bf16 %v604_v8, %v603_v7  ;;  %v595_v15 = vld [vmem:[%s1975_s22] sm:$0xff]  ;;  %s1976_s13 = scalar_lea.vmem %s1925_s0, %s1757_s18  ;;  %s1979_s22 = sld [smem:[#allocation19_spill]]  ;;  %v933_v35 = vshrl.u32 %v932_v33, 7 }
  0x35   : > { %1417 = vmatpush3.bf16.msra.mxu1 %v1416_v5  ;;  %v1413_v14 = vpack.c.bf16 %v600_v11, %v599_v10  ;;  %v594_v16 = vld [vmem:[%s1976_s13] sm:$0xff]  ;;  %v606_v27 = vld [vmem:[%s1793_s28 + $0x8] sm:$0xff]  ;;  %v607_v28 = vld [vmem:[%s1793_s28 + $0x10] sm:$0xff]  ;;  %s1981_s17 = sld [smem:[#allocation9_spill]] }
  0x36   : > { %1411 = vmatpush3.bf16.msra.mxu0 %v1410_v9  ;;  %1418 = vmatprep.subr.bf16.mxu1 %v1604_v4  ;;  %v1323_v17 = vld [vmem:[%s575_s16] ss:$0 sm:$0xff]  ;;  %v608_v30 = vld [vmem:[%s1793_s28 + $0x18] sm:$0xff]  ;;  %v934_v36 = vsub.s32 0, %v933_v35 }
  0x37   : > { %1412 = vmatprep.subr.bf16.mxu0 %v1604_v4  ;;  %v1321_v18 = vld [vmem:[%s1977_s24] ss:$0 sm:$0xff]  ;;  %v1425_v31 = vpack.c.bf16 %v608_v30, %v607_v28 }
  0x38   : > { %v605_v26 = vld [vmem:[%s1793_s28] sm:$0xff] }
  0x39   : > { %1420 = vmatpush3.bf16.msra.mxu1 %v1419_v13  ;;  %v1422_v29 = vpack.c.bf16 %v606_v27, %v605_v26  ;;  %v596_v32 = vld [vmem:[%s1978_s26] sm:$0xff] }
  0x3a   : > { %1414 = vmatpush3.bf16.msra.mxu0 %v1413_v14  ;;  %1394 = vmatprep.subr.mxu1 %v1606_v12  ;;  %s1980_s15 = scalar_lea.vmem %s1979_s22, %s1751_s30  ;;  %v1325_v50 = vld [vmem:[%s583_s25] ss:$0 sm:$0xff] }
  0x3b   : > { %1421 = vmatprep.subr.bf16.mxu0 %v1604_v4  ;;  %v929_v34 = vld [vmem:[%s1980_s15] sm:$0x1]  ;;  %p1331_p1 = scmp.ne.s32.totalorder %s1981_s17, 3 }
  0x3c   : > { %1381 = vmatmul.mubr.msk.f32.vlgmr.msra.gmra.mrb[0].mxu1 %vm617_vm2, %v595_v15  ;;  %vm930_vm4 = vcmp.eq.s32.totalorder %v929_v34, 0  ;;  %v609_v53 = vld [vmem:[%s1803_s20] sm:$0xff]  ;;  %s1982_s25 = sld [smem:[#allocation21_spill]] (!%p1331_p1) }
  0x3d   : > { %1370 = vmatmul.mubr.msk.f32.vlgmr.msra.gmra.mrb[0].mxu0 %vm617_vm2, %v594_v16  ;;  %1396 = vmatprep.mubr.msk.f32.mxu1 %vm1605_vm1, %v1606_v12  ;;  %v931_v38 = vsel %vm930_vm4, 1, %v1607_v37  ;;  %v1022_v59 = vld [vmem:[#allocation2] sm:$0xff] }
  0x3e   : > { %1391 = vmatprep.mubr.msk.f32.mxu0 %vm1605_vm1, %v1606_v12  ;;  %1423 = vmatpush3.bf16.msra.mxu0 %v1422_v29  ;;  %v935_v39 = vrot.slane %v931_v38, %v934_v36 }
  0x3f   : > { %1424 = vmatprep.subr.bf16.mxu0 %v1604_v4 }
  0x40   : > { %vm936_vm5 = vcmp.eq.s32.totalorder %v935_v39, 1 }
  0x42   : > { %1426 = vmatpush3.bf16.msra.mxu0 %v1425_v31  ;;  %v1332_v0 = vld [vmem:[%s1982_s25] ss:$0 sm:$0xff] (!%p1331_p1) }
  0x43   : > { %1404 = vmatprep.subr.mxu0 %v1606_v12 }
  0x45   : > { %1392 = vmatmul.mubr.msk.f32.vlgmr.msra.gmra.mrb[2].mxu0 %vm617_vm2, %v596_v32 }
  0x46   : > { %1406 = vmatprep.mubr.msk.f32.mxu0 %vm1605_vm1, %v1606_v12  ;;  %1405 = vmatpush3.msra.mxu0 %v609_v53 }
 0x10f   : > { %v767_v19 = vpop.f32.mrb[0].mxu1 }
 0x110   : > { %v768_v20 = vadd.f32 %v1323_v17, %v767_v19  ;;  %v687_v21 = vpop.f32.mrb[0].mxu0  ;;  %v1382_v22 = vpop.f32.mrb[1].mxu1 }
 0x111   : > { %v688_v23 = vadd.f32 %v1321_v18, %v687_v21  ;;  %v1371_v24 = vpop.f32.mrb[1].mxu0 }
 0x112   : > { %1395 = vmatpush3.xpose.msk.msra.mxu1 %vm852_vm3, %v768_v20 }
 0x113   : > { %v851_v25 = vmul.f32 0.35355338, %v688_v23  ;;  %1399 = vmatprep.subr.mxu1 %v1606_v12 }
 0x115   : > { %1397 = vmatmul.mubr.msk.f32.vlgmr.msra.gmra.mrb[2].mxu1 %vm852_vm3, %v851_v25 }
 0x116   : > { %1401 = vmatprep.mubr.msk.f32.mxu1 %vm1605_vm1, %v1606_v12 }
 0x118   : > { %v847_v49 = vpop.f32.mrb[2].mxu0 }
 0x119   : > { %v1393_v51 = vpop.f32.mrb[3].mxu0  ;;  %v848_v52 = vadd.f32 %v1325_v50, %v847_v49 }
 0x11b   : > { %1400 = vmatpush3.msra.mxu1 %v848_v52 }
 0x1e8   : > { %v925_v40 = vpop.f32.mrb[2].mxu1 }
 0x1e9   : > { %v937_v41 = vsel %vm936_vm5, -1e+09, %v925_v40  ;;  %v1398_v42 = vpop.f32.mrb[3].mxu1 }
 0x1ea   : > { %v938_v43 = vsel %vm852_vm3, %v937_v41, -inf }
 0x1eb   : > { %939 = vmax.xlane.f32.xlu0 %v938_v43 }
 0x278   : > { %v940_v44 = vpop.xlane.xlu0 %939 }
 0x279   : > { %v941_v45 = vsub.f32 %v937_v41, %v940_v44 }
 0x27b   : > { %v942_v46 = vmul.f32 1.442695, %v941_v45 }
 0x27d   : > { %1503 = vpow2.f32 %v942_v46 }
 0x287   : > { %v1504_v47 = vpop.eup %1503 }
 0x288   : > { %v944_v48 = vsel %vm852_vm3, %v1504_v47, 0.0 }
 0x289   : > { %945 = vadd.xlane.f32.xlu0 %v944_v48 }
 0x316   : > { %v946_v54 = vpop.xlane.xlu0 %945 }
 0x317   : > { %1505 = vrcp.f32 %v946_v54 }
 0x321   : > { %v1506_v55 = vpop.eup %1505 }
 0x322   : > { %v948_v56 = vmul.f32 %v1506_v55, %v1504_v47 }
 0x324   : > { %1402 = vmatmul.mubr.msk.f32.vlgmr.msra.gmra.mrb[4].mxu1 %vm852_vm3, %v948_v56 }
 0x3f7   : > { %v1018_v57 = vpop.f32.mrb[4].mxu1 }
 0x3f8   : > { %v1403_v58 = vpop.f32.mrb[5].mxu1  ;;  %1407 = vmatmul.mubr.msk.f32.vlgmr.msra.gmra.mrb[4].mxu0 %vm852_vm3, %v1018_v57 }
 0x4c8   : > { %1101 = sbr.rel (%p1331_p1) target bundleno = 1241 (0x4d9), region = 76 }
 0x4cb   : > { %v1092_v60 = vpop.f32.mrb[4].mxu0 }
 0x4cc   : > { %v1096_v61 = vadd.f32 %v1092_v60, %v1022_v59  ;;  %v1408_v62 = vpop.f32.mrb[5].mxu0 }
 0x4ce   : > { %1097 = vst.msk [vmem:[#allocation2] sm:$0xff] %vm617_vm2, %v1096_v61 }
 0x4d5   : > { %v1102_v63 = vld [vmem:[#allocation2] sm:$0xff] }
 0x4d6   : > { %v1110_v1 = vadd.f32 %v1332_v0, %v1102_v63 }
 0x4d8   : > { %1111 = vst.msk [vmem:[%s544_s3] sm:$0xff] %vm617_vm2, %v1110_v1 }
 0x4d9 PF: > { %s1983_s19 = sld [smem:[#allocation10_spill]]  ;;  %s1984_s13 = sld [smem:[#allocation7_spill]] }
 0x4da   : > { %s1986_s24 = sld [smem:[#allocation22_spill]]  ;;  %s1126_s26 = sshll.u32 %s544_s3, 4  ;;  %s1127_s26 = int_to_ptr.vmem [resolvable:$true] %s1126_s26 }
 0x4db   : > { %s1507_s22 = scalar_lea.vmem %s1127_s26, 128  ;;  %s1608_s15 = smov [#allocation3]  }
 0x4dc   : > { %p1508_p2 = scmp.ne.s32.totalorder %s1127_s26, %s1507_s22  ;;  %s1511_s30 = sshll.u32 %s1608_s15, 4  ;;  %s1512_s30 = int_to_ptr.vmem [resolvable:$false] %s1511_s30 }
 0x4dd   : > { %s1513_s18 = scalar_lea.vmem %s1512_s30, 256  ;;  %p1514_p6 = scmp.lt.s32.totalorder %s1127_s26, %s1512_s30 }
 0x4de   : > { %p1509_p4 = pnand %p1508_p2, %p1723_p3  ;;  %p1515_p7 = scmp.lt.s32.totalorder %s1513_s18, %s1507_s22 }
 0x4df   : > { %s1334_s23 = sshll.u32 %s1983_s19, 7  ;;  %s1988_s4 = sand.u32 1, %s1984_s13  }
 0x4e0   : > { %s1987_s16 = smov %s1986_s24  ;;  %s1874_s14 = scalar_lea.hbm %s1986_s24, %s1334_s23 }
 0x4e1   : > { %s1113_s21 = scalar_lea.sflag [#allocation4], %s1988_s4  ;;  %p1510_p5 = pneg %p1509_p4 }
 0x4e2   : > { %p1516_p8 = por %p1515_p7, %p1514_p6 }
 0x4e4   : > { %p1517_p10 = pnand %p1516_p8, %p1510_p5 }
 0x4e6   : > { %1520 = shalt.err (!%p1517_p10)
}
 0x4e7   : > { %s1521_s29 = scalar_lea.hbm %s1874_s14, 128  ;;  %s1525_s20 = scalar_lea.hbm %s1987_s16, 256 }
 0x4e8   : > { %p1522_p11 = scmp.ne.s32.totalorder %s1874_s14, %s1521_s29  ;;  %p1526_p0 = scmp.lt.u32.totalorder %s1874_s14, %s1987_s16 }
 0x4e9   : > { %p1527_p1 = scmp.lt.u32.totalorder %s1525_s20, %s1521_s29  ;;  %p1529_p4 = scmp.lt.u32.totalorder %s1521_s29, %s1874_s14 }
 0x4ea   : > { %p1523_p12 = pnand %p1522_p11, %p1723_p3 }
 0x4eb   : > { %p1528_p2 = por %p1527_p1, %p1526_p0 }
 0x4ec   : > { %p1524_p13 = pneg %p1523_p12 }
 0x4ed   : > { %p1530_p5 = por %p1529_p4, %p1528_p2 }
 0x4ef   : > { %p1531_p6 = pnand %p1530_p5, %p1524_p13 }
 0x4f1   : > { %1534 = shalt.err (!%p1531_p6)
}
 0x4f2   : > { %1427 = dma.vmem_to_hbm [thread:$0]  (%p1723_p3), %s1127_s26, 128, %s1874_s14, %s1113_s21  }
 0x4f3 PF: > { %s1989_s19 = sld [smem:[#allocation13_spill]]  ;;  %s1990_s13 = sld [smem:[#allocation6_spill]] }
 0x4f9   : > { %p1433_p7 = scmp.ge.s32.totalorder %s1989_s19, 2  ;;  %s1138_s12 = sand.u32 1, %s1990_s13  }
 0x4fa   : > { %s1139_s11 = scalar_lea.sflag [#allocation4], %s1138_s12 }
 0x4fb   : > { %p1430_p8 = pnand %p1433_p7, %p1733_p9 }
 0x4fd   : > { %1568 = dma.done.wait (!%p1430_p8), %s1139_s11, 128  }
 0x4fe   : > { %1570 = vsyncadd (!%p1430_p8), %s1139_s11, 4294967168  ;;  %s25_s28 = sadd.s32 1, %s1989_s19   ;;  %s1992_s21 = sld [smem:[#allocation7_spill]] }
 0x4ff   : > { %p22_p10 = scmp.ge.s32.totalorder %s25_s28, 10   ;;  %s1993_s22 = sld [smem:[#allocation8_spill]] }
 0x500   : > { %s1994_s23 = sld [smem:[#allocation18_spill]]  ;;  %s1995_s24 = sld [smem:[#allocation11_spill]] }
 0x501   : > { %s1996_s25 = sld [smem:[#allocation12_spill]]  ;;  %s1997_s26 = sld [smem:[#allocation14_spill]] }
 0x502   : > { %s1998_s27 = sld [smem:[#allocation16_spill]]  ;;  %24 = sbr.rel (!%p22_p10) target bundleno = 10 (0xa), region = 141 }
 0x509   :  { %1144 = vsyncpa [#allocation4], 1 }
 0x50a   :  { %1146 = vsyncpa [#allocation4 + $0x1], 1 }

</bundles_post_ra>
